<compile_context>
chip_gen: v7x
topology: tpu7x:2x2x1
jax: 0.10.0
libtpu: 0.0.40
codegen_flags: <defaults>
</compile_context>

<pallas_src>
import jax
import jax.numpy as jnp
from jax.experimental import pallas as pl
from jax.experimental.pallas import tpu as pltpu


def _round_up(x, m):
    return ((x + m - 1) // m) * m


# --------------------------------------------------------------------------- #
# Kernel
# --------------------------------------------------------------------------- #
def _critic_kernel(obs_ref, act_ref, w1_ref, b1_ref, w2_ref, b2_ref,
                   w3_ref, b3_ref, q_ref):
    tb = obs_ref.shape[0]
    obs_dim = obs_ref.shape[1]
    act_dim = act_ref.shape[1]
    in_dim = w1_ref.shape[0]
    hidden = w1_ref.shape[1]

    # ---- Layer 1: fused concat -> h1 = [obs || act] @ W1 + b1, ReLU --------
    if in_dim <= 16:
        # Tiny contraction: do K broadcast-FMAs on the VPU instead of a
        # <=5%-utilized MXU pass (and avoid two separate pushes).
        obs = obs_ref[...].astype(jnp.float32)
        act = act_ref[...].astype(jnp.float32)
        w1 = w1_ref[...]
        h1 = jnp.zeros((tb, hidden), jnp.float32)
        for k in range(obs_dim):
            h1 = h1 + obs[:, k:k + 1] * w1[k:k + 1, :]
        for k in range(act_dim):
            h1 = h1 + act[:, k:k + 1] * w1[obs_dim + k:obs_dim + k + 1, :]
    else:
        # Larger input dims: two bf16 MXU pushes accumulating in f32.
        h1 = jnp.dot(obs_ref[...].astype(jnp.bfloat16),
                     w1_ref[:obs_dim, :].astype(jnp.bfloat16),
                     preferred_element_type=jnp.float32)
        h1 = h1 + jnp.dot(act_ref[...].astype(jnp.bfloat16),
                          w1_ref[obs_dim:, :].astype(jnp.bfloat16),
                          preferred_element_type=jnp.float32)
    h1 = jnp.maximum(h1 + b1_ref[...], 0.0)                      # f32 VPU

    # ---- Layer 2: (TB,H) @ (H,H), bf16 MXU, f32 accumulate, bias + ReLU ----
    h2 = jnp.dot(h1.astype(jnp.bfloat16), w2_ref[...],
                 preferred_element_type=jnp.float32)
    h2 = jnp.maximum(h2 + b2_ref[...], 0.0)                      # f32 VPU

    # ---- Layer 3: lane-dense output row: (1,H) x (TB,H) -> (1,TB) ----------
    q_row = jax.lax.dot_general(w3_ref[...], h2, (((1,), (1,)), ((), ())),
                                preferred_element_type=jnp.float32)
    q_ref[...] = (q_row + b3_ref[0, 0]).astype(q_ref.dtype)      # b3 from SMEM


# --------------------------------------------------------------------------- #
# Wrapper
# --------------------------------------------------------------------------- #
def _tb_cap():
    """Per-generation batch-tile cap: 512 for 64 MiB VMEM (v7x), 1024 for 128 MiB."""
    try:
        vmem = pltpu.get_tpu_info().vmem_capacity_bytes
    except Exception:
        vmem = 64 << 20  # conservative default
    return 512 if vmem <= (64 << 20) else 1024


def _choose_tb(batch, cap):
    if batch <= 8:
        return batch                       # single tile; block == full array
    tb = _round_up((batch + 1) // 2, 8)    # >= 2 tiles -> both v7x cores get work
    return max(8, min(cap, tb))


def critic_forward(obs, action, params):
    """obs: (B, obs_dim), action: (B, action_dim) -> q_value: (B, 1) float32."""
    w1, b1, w2, b2, w3, b3 = params
    batch, obs_dim = obs.shape
    action_dim = action.shape[1]
    in_dim, hidden = w1.shape
    assert in_dim == obs_dim + action_dim

    tb = _choose_tb(batch, _tb_cap())
    num_tiles = pl.cdiv(batch, tb)
    grid = (num_tiles,)

    flops = 2 * batch * (in_dim * hidden + hidden * hidden + hidden)
    bytes_accessed = int(
        obs.size * obs.dtype.itemsize + action.size * action.dtype.itemsize
        + sum(int(p.size) * p.dtype.itemsize for p in params) + batch * 4)

    # Scoped-VMEM budget: resident weights (x2 in case single-buffering is
    # unavailable) + double-buffered activations + f32 intermediates, 2x margin.
    weight_bytes = sum(int(p.size) * p.dtype.itemsize for p in (w1, b1, w2, b2, w3))
    interm_bytes = 4 * tb * hidden * 4
    io_bytes = 2 * tb * (obs_dim + action_dim + 2) * 4
    vmem_limit = int(min(64 << 20,
                         max(2 * (2 * weight_bytes + interm_bytes + io_bytes),
                             8 << 20)))

    out_shape = jax.ShapeDtypeStruct((num_tiles, tb), jnp.float32)
    args = (obs, action, w1, b1, w2, b2, w3, b3)

    def run(single_buffer_weights):
        def resident(arr):
            nd = arr.ndim
            imap = lambda i: (0,) * nd     # constant block -> stays in VMEM
            if single_buffer_weights:
                return pl.BlockSpec(arr.shape, imap, pipeline_mode=pl.Buffered(1))
            return pl.BlockSpec(arr.shape, imap)

        in_specs = [
            pl.BlockSpec((tb, obs_dim), lambda i: (i, 0)),
            pl.BlockSpec((tb, action_dim), lambda i: (i, 0)),
            resident(w1), resident(b1), resident(w2), resident(b2), resident(w3),
            pl.BlockSpec(memory_space=pltpu.MemorySpace.SMEM),   # b3 scalar
        ]
        return pl.pallas_call(
            _critic_kernel,
            out_shape=out_shape,
            grid=grid,
            in_specs=in_specs,
            out_specs=pl.BlockSpec((1, tb), lambda i: (i, 0)),   # lane-dense row
            compiler_params=pltpu.CompilerParams(
                dimension_semantics=("parallel",),
                vmem_limit_bytes=vmem_limit),
            cost_estimate=pl.CostEstimate(
                flops=flops, transcendentals=0, bytes_accessed=bytes_accessed),
        )(*args)

    try:
        q_slab = run(True)
    except Exception:
        # pl.Buffered(1) (single-buffered resident weights) not supported on
        # this jax version -> fall back to default double-buffering.
        q_slab = run(False)

    return q_slab.reshape(num_tiles * tb, 1)[:batch]


# --------------------------------------------------------------------------- #
# Params (PyTorch nn.Linear-style init) + pure-JAX reference
# --------------------------------------------------------------------------- #
def init_critic_params(key, obs_dim, action_dim, hidden_dim, lane_pad=128):
    """U[-1/sqrt(fan_in), 1/sqrt(fan_in)] init; hidden dim zero-padded to a
    multiple of `lane_pad` (exactly preserves the hidden_dim-unit network)."""
    in_dim = obs_dim + action_dim
    h = hidden_dim
    hp = _round_up(h, lane_pad)
    keys = jax.random.split(key, 6)

    def uniform(k, shape, fan_in):
        bound = 1.0 / jnp.sqrt(jnp.float32(fan_in))
        return jax.random.uniform(k, shape, jnp.float32, -bound, bound)

    w1 = jnp.pad(uniform(keys[0], (in_dim, h), in_dim), ((0, 0), (0, hp - h)))
    b1 = jnp.pad(uniform(keys[1], (1, h), in_dim), ((0, 0), (0, hp - h)))
    w2 = jnp.pad(uniform(keys[2], (h, h), h),
                 ((0, hp - h), (0, hp - h))).astype(jnp.bfloat16)
    b2 = jnp.pad(uniform(keys[3], (1, h), h), ((0, 0), (0, hp - h)))
    w3 = jnp.pad(uniform(keys[4], (1, h), h), ((0, 0), (0, hp - h)))
    b3 = uniform(keys[5], (1, 1), h)
    return (w1, b1, w2, b2, w3, b3)


def critic_reference(obs, action, params):
    """Pure-JAX reference mirroring the kernel's numerics."""
    w1, b1, w2, b2, w3, b3 = params
    in_dim = w1.shape[0]
    hi = jax.lax.Precision.HIGHEST
    x = jnp.concatenate([obs.astype(jnp.float32), action.astype(jnp.float32)], -1)
    if in_dim <= 16:
        h1 = jnp.dot(x, w1, precision=hi)
    else:
        h1 = jnp.dot(x.astype(jnp.bfloat16), w1.astype(jnp.bfloat16),
                     preferred_element_type=jnp.float32)
    h1 = jnp.maximum(h1 + b1, 0.0)
    h2 = jnp.dot(h1.astype(jnp.bfloat16), w2, preferred_element_type=jnp.float32)
    h2 = jnp.maximum(h2 + b2, 0.0)
    return jnp.dot(h2, w3.T, precision=hi) + b3


# --------------------------------------------------------------------------- #
if __name__ == "__main__":
    obs_dim, action_dim, hidden_dim = 8, 4, 32
    batch = 2

    key = jax.random.PRNGKey(0)
    k_params, k_obs, k_act = jax.random.split(key, 3)

    params = init_critic_params(k_params, obs_dim, action_dim, hidden_dim)
    obs = jax.random.normal(k_obs, (batch, obs_dim), jnp.float32)
    action = jax.random.normal(k_act, (batch, action_dim), jnp.float32)

    q = critic_forward(obs, action, params)
    q = jax.block_until_ready(q)

    q_ref = critic_reference(obs, action, params)
    assert q.shape == (batch, 1)
    assert jnp.allclose(q, q_ref, atol=2e-3, rtol=2e-3), (q, q_ref)

    print("KERNEL_OK")
</pallas_src>

<mosaic_0001>
module attributes {stable_mosaic.version = 11 : i64} {
  func.func @_critic_kernel(%arg0: i32, %arg1: memref<2x8xf32, #tpu.memory_space<vmem>>, %arg2: memref<2x4xf32, #tpu.memory_space<vmem>>, %arg3: memref<12x128xf32, #tpu.memory_space<vmem>>, %arg4: memref<1x128xf32, #tpu.memory_space<vmem>>, %arg5: memref<128x128xbf16, #tpu.memory_space<vmem>>, %arg6: memref<1x128xf32, #tpu.memory_space<vmem>>, %arg7: memref<1x128xf32, #tpu.memory_space<vmem>>, %arg8: memref<1x1xf32, #tpu.memory_space<smem>>, %arg9: memref<1x2xf32, #tpu.memory_space<vmem>>) attributes {dimension_semantics = [#tpu.dimension_semantics<parallel>], iteration_bounds = array<i64: 1>, scalar_prefetch = 0 : i64, scratch_operands = 0 : i64, tpu.core_type = #tpu.core_type<tc>, window_params = [{transform_indices = @transform_0, window_bounds = array<i64: 2, 8>}, {transform_indices = @transform_1, window_bounds = array<i64: 2, 4>}, {pipeline_mode = #tpu.pipeline_mode<synchronous>, transform_indices = @transform_2, window_bounds = array<i64: 12, 128>}, {pipeline_mode = #tpu.pipeline_mode<synchronous>, transform_indices = @transform_3, window_bounds = array<i64: 1, 128>}, {pipeline_mode = #tpu.pipeline_mode<synchronous>, transform_indices = @transform_4, window_bounds = array<i64: 128, 128>}, {pipeline_mode = #tpu.pipeline_mode<synchronous>, transform_indices = @transform_5, window_bounds = array<i64: 1, 128>}, {pipeline_mode = #tpu.pipeline_mode<synchronous>, transform_indices = @transform_6, window_bounds = array<i64: 1, 128>}, {transform_indices = @transform_7, window_bounds = array<i64: 1, 1>}, {transform_indices = @transform_8, window_bounds = array<i64: 1, 2>}]} {
    %c0 = arith.constant 0 : index
    %c0_0 = arith.constant 0 : index
    %0 = vector.load %arg1[%c0, %c0_0] : memref<2x8xf32, #tpu.memory_space<vmem>>, vector<2x8xf32>
    %c0_1 = arith.constant 0 : index
    %c0_2 = arith.constant 0 : index
    %1 = vector.load %arg2[%c0_1, %c0_2] : memref<2x4xf32, #tpu.memory_space<vmem>>, vector<2x4xf32>
    %c0_3 = arith.constant 0 : index
    %c0_4 = arith.constant 0 : index
    %2 = vector.load %arg3[%c0_3, %c0_4] : memref<12x128xf32, #tpu.memory_space<vmem>>, vector<12x128xf32>
    %cst = arith.constant 0.000000e+00 : f32
    %3 = vector.broadcast %cst : f32 to vector<2x128xf32>
    %4 = vector.extract_strided_slice %0 {offsets = [0, 0], sizes = [2, 1], strides = [1, 1]} : vector<2x8xf32> to vector<2x1xf32>
    %5 = vector.extract_strided_slice %2 {offsets = [0, 0], sizes = [1, 128], strides = [1, 1]} : vector<12x128xf32> to vector<1x128xf32>
    %6 = vector.broadcast %4 : vector<2x1xf32> to vector<2x128xf32>
    %7 = vector.broadcast %5 : vector<1x128xf32> to vector<2x128xf32>
    %8 = arith.mulf %6, %7 : vector<2x128xf32>
    %9 = arith.addf %3, %8 : vector<2x128xf32>
    %10 = vector.extract_strided_slice %0 {offsets = [0, 1], sizes = [2, 1], strides = [1, 1]} : vector<2x8xf32> to vector<2x1xf32>
    %11 = vector.extract_strided_slice %2 {offsets = [1, 0], sizes = [1, 128], strides = [1, 1]} : vector<12x128xf32> to vector<1x128xf32>
    %12 = vector.broadcast %10 : vector<2x1xf32> to vector<2x128xf32>
    %13 = vector.broadcast %11 : vector<1x128xf32> to vector<2x128xf32>
    %14 = arith.mulf %12, %13 : vector<2x128xf32>
    %15 = arith.addf %9, %14 : vector<2x128xf32>
    %16 = vector.extract_strided_slice %0 {offsets = [0, 2], sizes = [2, 1], strides = [1, 1]} : vector<2x8xf32> to vector<2x1xf32>
    %17 = vector.extract_strided_slice %2 {offsets = [2, 0], sizes = [1, 128], strides = [1, 1]} : vector<12x128xf32> to vector<1x128xf32>
    %18 = vector.broadcast %16 : vector<2x1xf32> to vector<2x128xf32>
    %19 = vector.broadcast %17 : vector<1x128xf32> to vector<2x128xf32>
    %20 = arith.mulf %18, %19 : vector<2x128xf32>
    %21 = arith.addf %15, %20 : vector<2x128xf32>
    %22 = vector.extract_strided_slice %0 {offsets = [0, 3], sizes = [2, 1], strides = [1, 1]} : vector<2x8xf32> to vector<2x1xf32>
    %23 = vector.extract_strided_slice %2 {offsets = [3, 0], sizes = [1, 128], strides = [1, 1]} : vector<12x128xf32> to vector<1x128xf32>
    %24 = vector.broadcast %22 : vector<2x1xf32> to vector<2x128xf32>
    %25 = vector.broadcast %23 : vector<1x128xf32> to vector<2x128xf32>
    %26 = arith.mulf %24, %25 : vector<2x128xf32>
    %27 = arith.addf %21, %26 : vector<2x128xf32>
    %28 = vector.extract_strided_slice %0 {offsets = [0, 4], sizes = [2, 1], strides = [1, 1]} : vector<2x8xf32> to vector<2x1xf32>
    %29 = vector.extract_strided_slice %2 {offsets = [4, 0], sizes = [1, 128], strides = [1, 1]} : vector<12x128xf32> to vector<1x128xf32>
    %30 = vector.broadcast %28 : vector<2x1xf32> to vector<2x128xf32>
    %31 = vector.broadcast %29 : vector<1x128xf32> to vector<2x128xf32>
    %32 = arith.mulf %30, %31 : vector<2x128xf32>
    %33 = arith.addf %27, %32 : vector<2x128xf32>
    %34 = vector.extract_strided_slice %0 {offsets = [0, 5], sizes = [2, 1], strides = [1, 1]} : vector<2x8xf32> to vector<2x1xf32>
    %35 = vector.extract_strided_slice %2 {offsets = [5, 0], sizes = [1, 128], strides = [1, 1]} : vector<12x128xf32> to vector<1x128xf32>
    %36 = vector.broadcast %34 : vector<2x1xf32> to vector<2x128xf32>
    %37 = vector.broadcast %35 : vector<1x128xf32> to vector<2x128xf32>
    %38 = arith.mulf %36, %37 : vector<2x128xf32>
    %39 = arith.addf %33, %38 : vector<2x128xf32>
    %40 = vector.extract_strided_slice %0 {offsets = [0, 6], sizes = [2, 1], strides = [1, 1]} : vector<2x8xf32> to vector<2x1xf32>
    %41 = vector.extract_strided_slice %2 {offsets = [6, 0], sizes = [1, 128], strides = [1, 1]} : vector<12x128xf32> to vector<1x128xf32>
    %42 = vector.broadcast %40 : vector<2x1xf32> to vector<2x128xf32>
    %43 = vector.broadcast %41 : vector<1x128xf32> to vector<2x128xf32>
    %44 = arith.mulf %42, %43 : vector<2x128xf32>
    %45 = arith.addf %39, %44 : vector<2x128xf32>
    %46 = vector.extract_strided_slice %0 {offsets = [0, 7], sizes = [2, 1], strides = [1, 1]} : vector<2x8xf32> to vector<2x1xf32>
    %47 = vector.extract_strided_slice %2 {offsets = [7, 0], sizes = [1, 128], strides = [1, 1]} : vector<12x128xf32> to vector<1x128xf32>
    %48 = vector.broadcast %46 : vector<2x1xf32> to vector<2x128xf32>
    %49 = vector.broadcast %47 : vector<1x128xf32> to vector<2x128xf32>
    %50 = arith.mulf %48, %49 : vector<2x128xf32>
    %51 = arith.addf %45, %50 : vector<2x128xf32>
    %52 = vector.extract_strided_slice %1 {offsets = [0, 0], sizes = [2, 1], strides = [1, 1]} : vector<2x4xf32> to vector<2x1xf32>
    %53 = vector.extract_strided_slice %2 {offsets = [8, 0], sizes = [1, 128], strides = [1, 1]} : vector<12x128xf32> to vector<1x128xf32>
    %54 = vector.broadcast %52 : vector<2x1xf32> to vector<2x128xf32>
    %55 = vector.broadcast %53 : vector<1x128xf32> to vector<2x128xf32>
    %56 = arith.mulf %54, %55 : vector<2x128xf32>
    %57 = arith.addf %51, %56 : vector<2x128xf32>
    %58 = vector.extract_strided_slice %1 {offsets = [0, 1], sizes = [2, 1], strides = [1, 1]} : vector<2x4xf32> to vector<2x1xf32>
    %59 = vector.extract_strided_slice %2 {offsets = [9, 0], sizes = [1, 128], strides = [1, 1]} : vector<12x128xf32> to vector<1x128xf32>
    %60 = vector.broadcast %58 : vector<2x1xf32> to vector<2x128xf32>
    %61 = vector.broadcast %59 : vector<1x128xf32> to vector<2x128xf32>
    %62 = arith.mulf %60, %61 : vector<2x128xf32>
    %63 = arith.addf %57, %62 : vector<2x128xf32>
    %64 = vector.extract_strided_slice %1 {offsets = [0, 2], sizes = [2, 1], strides = [1, 1]} : vector<2x4xf32> to vector<2x1xf32>
    %65 = vector.extract_strided_slice %2 {offsets = [10, 0], sizes = [1, 128], strides = [1, 1]} : vector<12x128xf32> to vector<1x128xf32>
    %66 = vector.broadcast %64 : vector<2x1xf32> to vector<2x128xf32>
    %67 = vector.broadcast %65 : vector<1x128xf32> to vector<2x128xf32>
    %68 = arith.mulf %66, %67 : vector<2x128xf32>
    %69 = arith.addf %63, %68 : vector<2x128xf32>
    %70 = vector.extract_strided_slice %1 {offsets = [0, 3], sizes = [2, 1], strides = [1, 1]} : vector<2x4xf32> to vector<2x1xf32>
    %71 = vector.extract_strided_slice %2 {offsets = [11, 0], sizes = [1, 128], strides = [1, 1]} : vector<12x128xf32> to vector<1x128xf32>
    %72 = vector.broadcast %70 : vector<2x1xf32> to vector<2x128xf32>
    %73 = vector.broadcast %71 : vector<1x128xf32> to vector<2x128xf32>
    %74 = arith.mulf %72, %73 : vector<2x128xf32>
    %75 = arith.addf %69, %74 : vector<2x128xf32>
    %c0_5 = arith.constant 0 : index
    %c0_6 = arith.constant 0 : index
    %76 = vector.load %arg4[%c0_5, %c0_6] : memref<1x128xf32, #tpu.memory_space<vmem>>, vector<1x128xf32>
    %77 = vector.broadcast %76 : vector<1x128xf32> to vector<2x128xf32>
    %78 = arith.addf %75, %77 : vector<2x128xf32>
    %cst_7 = arith.constant 0.000000e+00 : f32
    %79 = vector.broadcast %cst_7 : f32 to vector<2x128xf32>
    %80 = arith.maximumf %78, %79 : vector<2x128xf32>
    %81 = arith.truncf %80 : vector<2x128xf32> to vector<2x128xbf16>
    %c0_8 = arith.constant 0 : index
    %c0_9 = arith.constant 0 : index
    %82 = vector.load %arg5[%c0_8, %c0_9] : memref<128x128xbf16, #tpu.memory_space<vmem>>, vector<128x128xbf16>
    %cst_10 = arith.constant dense<0.000000e+00> : vector<2x128xf32>
    %83 = tpu.matmul %81, %82, %cst_10 {dimension_numbers = #tpu.dot_dimension_numbers<[1], [0], [0], [1], [0, 0, 1, 1], [], []>} : vector<2x128xbf16>, vector<128x128xbf16>, vector<2x128xf32> -> vector<2x128xf32>
    %c0_11 = arith.constant 0 : index
    %c0_12 = arith.constant 0 : index
    %84 = vector.load %arg6[%c0_11, %c0_12] : memref<1x128xf32, #tpu.memory_space<vmem>>, vector<1x128xf32>
    %85 = vector.broadcast %84 : vector<1x128xf32> to vector<2x128xf32>
    %86 = arith.addf %83, %85 : vector<2x128xf32>
    %cst_13 = arith.constant 0.000000e+00 : f32
    %87 = vector.broadcast %cst_13 : f32 to vector<2x128xf32>
    %88 = arith.maximumf %86, %87 : vector<2x128xf32>
    %c0_14 = arith.constant 0 : index
    %c0_15 = arith.constant 0 : index
    %89 = vector.load %arg7[%c0_14, %c0_15] : memref<1x128xf32, #tpu.memory_space<vmem>>, vector<1x128xf32>
    %cst_16 = arith.constant dense<0.000000e+00> : vector<1x2xf32>
    %90 = tpu.matmul %89, %88, %cst_16 {dimension_numbers = #tpu.dot_dimension_numbers<[1], [1], [0], [0], [0, 0, 1, 0], [], []>} : vector<1x128xf32>, vector<2x128xf32>, vector<1x2xf32> -> vector<1x2xf32>
    %c0_17 = arith.constant 0 : index
    %c0_18 = arith.constant 0 : index
    %91 = memref.load %arg8[%c0_17, %c0_18] : memref<1x1xf32, #tpu.memory_space<smem>>
    %92 = vector.broadcast %91 : f32 to vector<1x2xf32>
    %93 = arith.addf %90, %92 : vector<1x2xf32>
    %c0_19 = arith.constant 0 : index
    %c0_20 = arith.constant 0 : index
    %94 = vector.load %arg9[%c0_19, %c0_20] : memref<1x2xf32, #tpu.memory_space<vmem>>, vector<1x2xf32>
    tpu.vector_store %arg9[%c0_19, %c0_20], %93 {strides = array<i32>} : memref<1x2xf32, #tpu.memory_space<vmem>>, vector<1x2xf32>,
    return
  }
  func.func @transform_0(%arg0: i32) -> (i32, i32) {
    %c0_i32 = arith.constant 0 : i32
    %c0_i32_0 = arith.constant 0 : i32
    return %arg0, %c0_i32 : i32, i32
  }
  func.func @transform_1(%arg0: i32) -> (i32, i32) {
    %c0_i32 = arith.constant 0 : i32
    %c0_i32_0 = arith.constant 0 : i32
    return %arg0, %c0_i32 : i32, i32
  }
  func.func @transform_2(%arg0: i32) -> (i32, i32) {
    %c0_i32 = arith.constant 0 : i32
    %c0_i32_0 = arith.constant 0 : i32
    %c0_i32_1 = arith.constant 0 : i32
    return %c0_i32, %c0_i32_0 : i32, i32
  }
  func.func @transform_3(%arg0: i32) -> (i32, i32) {
    %c0_i32 = arith.constant 0 : i32
    %c0_i32_0 = arith.constant 0 : i32
    %c0_i32_1 = arith.constant 0 : i32
    return %c0_i32, %c0_i32_0 : i32, i32
  }
  func.func @transform_4(%arg0: i32) -> (i32, i32) {
    %c0_i32 = arith.constant 0 : i32
    %c0_i32_0 = arith.constant 0 : i32
    %c0_i32_1 = arith.constant 0 : i32
    return %c0_i32, %c0_i32_0 : i32, i32
  }
  func.func @transform_5(%arg0: i32) -> (i32, i32) {
    %c0_i32 = arith.constant 0 : i32
    %c0_i32_0 = arith.constant 0 : i32
    %c0_i32_1 = arith.constant 0 : i32
    return %c0_i32, %c0_i32_0 : i32, i32
  }
  func.func @transform_6(%arg0: i32) -> (i32, i32) {
    %c0_i32 = arith.constant 0 : i32
    %c0_i32_0 = arith.constant 0 : i32
    %c0_i32_1 = arith.constant 0 : i32
    return %c0_i32, %c0_i32_0 : i32, i32
  }
  func.func @transform_7(%arg0: i32) -> (i32, i32) {
    %c0_i32 = arith.constant 0 : i32
    %c0_i32_0 = arith.constant 0 : i32
    %c0_i32_1 = arith.constant 0 : i32
    return %c0_i32, %c0_i32_0 : i32, i32
  }
  func.func @transform_8(%arg0: i32) -> (i32, i32) {
    %c0_i32 = arith.constant 0 : i32
    %c0_i32_0 = arith.constant 0 : i32
    return %arg0, %c0_i32 : i32, i32
  }
}

module attributes {stable_mosaic.version = 11 : i64} {
  func.func @_critic_kernel(%arg0: i32, %arg1: memref<2x8xf32, #tpu.memory_space<vmem>>, %arg2: memref<2x4xf32, #tpu.memory_space<vmem>>, %arg3: memref<12x128xf32, #tpu.memory_space<vmem>>, %arg4: memref<1x128xf32, #tpu.memory_space<vmem>>, %arg5: memref<128x128xbf16, #tpu.memory_space<vmem>>, %arg6: memref<1x128xf32, #tpu.memory_space<vmem>>, %arg7: memref<1x128xf32, #tpu.memory_space<vmem>>, %arg8: memref<1x1xf32, #tpu.memory_space<smem>>, %arg9: memref<1x2xf32, #tpu.memory_space<vmem>>) attributes {dimension_semantics = [#tpu.dimension_semantics<parallel>], iteration_bounds = array<i64: 1>, scalar_prefetch = 0 : i64, scratch_operands = 0 : i64, tpu.core_type = #tpu.core_type<tc>, window_params = [{transform_indices = @transform_0, window_bounds = array<i64: 2, 8>}, {transform_indices = @transform_1, window_bounds = array<i64: 2, 4>}, {pipeline_mode = #tpu.pipeline_mode<synchronous>, transform_indices = @transform_2, window_bounds = array<i64: 12, 128>}, {pipeline_mode = #tpu.pipeline_mode<synchronous>, transform_indices = @transform_3, window_bounds = array<i64: 1, 128>}, {pipeline_mode = #tpu.pipeline_mode<synchronous>, transform_indices = @transform_4, window_bounds = array<i64: 128, 128>}, {pipeline_mode = #tpu.pipeline_mode<synchronous>, transform_indices = @transform_5, window_bounds = array<i64: 1, 128>}, {pipeline_mode = #tpu.pipeline_mode<synchronous>, transform_indices = @transform_6, window_bounds = array<i64: 1, 128>}, {transform_indices = @transform_7, window_bounds = array<i64: 1, 1>}, {transform_indices = @transform_8, window_bounds = array<i64: 1, 2>}]} {
    %c0 = arith.constant 0 : index
    %c0_0 = arith.constant 0 : index
    %0 = vector.load %arg1[%c0, %c0_0] : memref<2x8xf32, #tpu.memory_space<vmem>>, vector<2x8xf32>
    %c0_1 = arith.constant 0 : index
    %c0_2 = arith.constant 0 : index
    %1 = vector.load %arg2[%c0_1, %c0_2] : memref<2x4xf32, #tpu.memory_space<vmem>>, vector<2x4xf32>
    %c0_3 = arith.constant 0 : index
    %c0_4 = arith.constant 0 : index
    %2 = vector.load %arg3[%c0_3, %c0_4] : memref<12x128xf32, #tpu.memory_space<vmem>>, vector<12x128xf32>
    %cst = arith.constant 0.000000e+00 : f32
    %3 = vector.broadcast %cst : f32 to vector<2x128xf32>
    %4 = vector.extract_strided_slice %0 {offsets = [0, 0], sizes = [2, 1], strides = [1, 1]} : vector<2x8xf32> to vector<2x1xf32>
    %5 = vector.extract_strided_slice %2 {offsets = [0, 0], sizes = [1, 128], strides = [1, 1]} : vector<12x128xf32> to vector<1x128xf32>
    %6 = vector.broadcast %4 : vector<2x1xf32> to vector<2x128xf32>
    %7 = vector.broadcast %5 : vector<1x128xf32> to vector<2x128xf32>
    %8 = arith.mulf %6, %7 : vector<2x128xf32>
    %9 = arith.addf %3, %8 : vector<2x128xf32>
    %10 = vector.extract_strided_slice %0 {offsets = [0, 1], sizes = [2, 1], strides = [1, 1]} : vector<2x8xf32> to vector<2x1xf32>
    %11 = vector.extract_strided_slice %2 {offsets = [1, 0], sizes = [1, 128], strides = [1, 1]} : vector<12x128xf32> to vector<1x128xf32>
    %12 = vector.broadcast %10 : vector<2x1xf32> to vector<2x128xf32>
    %13 = vector.broadcast %11 : vector<1x128xf32> to vector<2x128xf32>
    %14 = arith.mulf %12, %13 : vector<2x128xf32>
    %15 = arith.addf %9, %14 : vector<2x128xf32>
    %16 = vector.extract_strided_slice %0 {offsets = [0, 2], sizes = [2, 1], strides = [1, 1]} : vector<2x8xf32> to vector<2x1xf32>
    %17 = vector.extract_strided_slice %2 {offsets = [2, 0], sizes = [1, 128], strides = [1, 1]} : vector<12x128xf32> to vector<1x128xf32>
    %18 = vector.broadcast %16 : vector<2x1xf32> to vector<2x128xf32>
    %19 = vector.broadcast %17 : vector<1x128xf32> to vector<2x128xf32>
    %20 = arith.mulf %18, %19 : vector<2x128xf32>
    %21 = arith.addf %15, %20 : vector<2x128xf32>
    %22 = vector.extract_strided_slice %0 {offsets = [0, 3], sizes = [2, 1], strides = [1, 1]} : vector<2x8xf32> to vector<2x1xf32>
    %23 = vector.extract_strided_slice %2 {offsets = [3, 0], sizes = [1, 128], strides = [1, 1]} : vector<12x128xf32> to vector<1x128xf32>
    %24 = vector.broadcast %22 : vector<2x1xf32> to vector<2x128xf32>
    %25 = vector.broadcast %23 : vector<1x128xf32> to vector<2x128xf32>
    %26 = arith.mulf %24, %25 : vector<2x128xf32>
    %27 = arith.addf %21, %26 : vector<2x128xf32>
    %28 = vector.extract_strided_slice %0 {offsets = [0, 4], sizes = [2, 1], strides = [1, 1]} : vector<2x8xf32> to vector<2x1xf32>
    %29 = vector.extract_strided_slice %2 {offsets = [4, 0], sizes = [1, 128], strides = [1, 1]} : vector<12x128xf32> to vector<1x128xf32>
    %30 = vector.broadcast %28 : vector<2x1xf32> to vector<2x128xf32>
    %31 = vector.broadcast %29 : vector<1x128xf32> to vector<2x128xf32>
    %32 = arith.mulf %30, %31 : vector<2x128xf32>
    %33 = arith.addf %27, %32 : vector<2x128xf32>
    %34 = vector.extract_strided_slice %0 {offsets = [0, 5], sizes = [2, 1], strides = [1, 1]} : vector<2x8xf32> to vector<2x1xf32>
    %35 = vector.extract_strided_slice %2 {offsets = [5, 0], sizes = [1, 128], strides = [1, 1]} : vector<12x128xf32> to vector<1x128xf32>
    %36 = vector.broadcast %34 : vector<2x1xf32> to vector<2x128xf32>
    %37 = vector.broadcast %35 : vector<1x128xf32> to vector<2x128xf32>
    %38 = arith.mulf %36, %37 : vector<2x128xf32>
    %39 = arith.addf %33, %38 : vector<2x128xf32>
    %40 = vector.extract_strided_slice %0 {offsets = [0, 6], sizes = [2, 1], strides = [1, 1]} : vector<2x8xf32> to vector<2x1xf32>
    %41 = vector.extract_strided_slice %2 {offsets = [6, 0], sizes = [1, 128], strides = [1, 1]} : vector<12x128xf32> to vector<1x128xf32>
    %42 = vector.broadcast %40 : vector<2x1xf32> to vector<2x128xf32>
    %43 = vector.broadcast %41 : vector<1x128xf32> to vector<2x128xf32>
    %44 = arith.mulf %42, %43 : vector<2x128xf32>
    %45 = arith.addf %39, %44 : vector<2x128xf32>
    %46 = vector.extract_strided_slice %0 {offsets = [0, 7], sizes = [2, 1], strides = [1, 1]} : vector<2x8xf32> to vector<2x1xf32>
    %47 = vector.extract_strided_slice %2 {offsets = [7, 0], sizes = [1, 128], strides = [1, 1]} : vector<12x128xf32> to vector<1x128xf32>
    %48 = vector.broadcast %46 : vector<2x1xf32> to vector<2x128xf32>
    %49 = vector.broadcast %47 : vector<1x128xf32> to vector<2x128xf32>
    %50 = arith.mulf %48, %49 : vector<2x128xf32>
    %51 = arith.addf %45, %50 : vector<2x128xf32>
    %52 = vector.extract_strided_slice %1 {offsets = [0, 0], sizes = [2, 1], strides = [1, 1]} : vector<2x4xf32> to vector<2x1xf32>
    %53 = vector.extract_strided_slice %2 {offsets = [8, 0], sizes = [1, 128], strides = [1, 1]} : vector<12x128xf32> to vector<1x128xf32>
    %54 = vector.broadcast %52 : vector<2x1xf32> to vector<2x128xf32>
    %55 = vector.broadcast %53 : vector<1x128xf32> to vector<2x128xf32>
    %56 = arith.mulf %54, %55 : vector<2x128xf32>
    %57 = arith.addf %51, %56 : vector<2x128xf32>
    %58 = vector.extract_strided_slice %1 {offsets = [0, 1], sizes = [2, 1], strides = [1, 1]} : vector<2x4xf32> to vector<2x1xf32>
    %59 = vector.extract_strided_slice %2 {offsets = [9, 0], sizes = [1, 128], strides = [1, 1]} : vector<12x128xf32> to vector<1x128xf32>
    %60 = vector.broadcast %58 : vector<2x1xf32> to vector<2x128xf32>
    %61 = vector.broadcast %59 : vector<1x128xf32> to vector<2x128xf32>
    %62 = arith.mulf %60, %61 : vector<2x128xf32>
    %63 = arith.addf %57, %62 : vector<2x128xf32>
    %64 = vector.extract_strided_slice %1 {offsets = [0, 2], sizes = [2, 1], strides = [1, 1]} : vector<2x4xf32> to vector<2x1xf32>
    %65 = vector.extract_strided_slice %2 {offsets = [10, 0], sizes = [1, 128], strides = [1, 1]} : vector<12x128xf32> to vector<1x128xf32>
    %66 = vector.broadcast %64 : vector<2x1xf32> to vector<2x128xf32>
    %67 = vector.broadcast %65 : vector<1x128xf32> to vector<2x128xf32>
    %68 = arith.mulf %66, %67 : vector<2x128xf32>
    %69 = arith.addf %63, %68 : vector<2x128xf32>
    %70 = vector.extract_strided_slice %1 {offsets = [0, 3], sizes = [2, 1], strides = [1, 1]} : vector<2x4xf32> to vector<2x1xf32>
    %71 = vector.extract_strided_slice %2 {offsets = [11, 0], sizes = [1, 128], strides = [1, 1]} : vector<12x128xf32> to vector<1x128xf32>
    %72 = vector.broadcast %70 : vector<2x1xf32> to vector<2x128xf32>
    %73 = vector.broadcast %71 : vector<1x128xf32> to vector<2x128xf32>
    %74 = arith.mulf %72, %73 : vector<2x128xf32>
    %75 = arith.addf %69, %74 : vector<2x128xf32>
    %c0_5 = arith.constant 0 : index
    %c0_6 = arith.constant 0 : index
    %76 = vector.load %arg4[%c0_5, %c0_6] : memref<1x128xf32, #tpu.memory_space<vmem>>, vector<1x128xf32>
    %77 = vector.broadcast %76 : vector<1x128xf32> to vector<2x128xf32>
    %78 = arith.addf %75, %77 : vector<2x128xf32>
    %cst_7 = arith.constant 0.000000e+00 : f32
    %79 = vector.broadcast %cst_7 : f32 to vector<2x128xf32>
    %80 = arith.maximumf %78, %79 : vector<2x128xf32>
    %81 = arith.truncf %80 : vector<2x128xf32> to vector<2x128xbf16>
    %c0_8 = arith.constant 0 : index
    %c0_9 = arith.constant 0 : index
    %82 = vector.load %arg5[%c0_8, %c0_9] : memref<128x128xbf16, #tpu.memory_space<vmem>>, vector<128x128xbf16>
    %cst_10 = arith.constant dense<0.000000e+00> : vector<2x128xf32>
    %83 = tpu.matmul %81, %82, %cst_10 {dimension_numbers = #tpu.dot_dimension_numbers<[1], [0], [0], [1], [0, 0, 1, 1], [], []>} : vector<2x128xbf16>, vector<128x128xbf16>, vector<2x128xf32> -> vector<2x128xf32>
    %c0_11 = arith.constant 0 : index
    %c0_12 = arith.constant 0 : index
    %84 = vector.load %arg6[%c0_11, %c0_12] : memref<1x128xf32, #tpu.memory_space<vmem>>, vector<1x128xf32>
    %85 = vector.broadcast %84 : vector<1x128xf32> to vector<2x128xf32>
    %86 = arith.addf %83, %85 : vector<2x128xf32>
    %cst_13 = arith.constant 0.000000e+00 : f32
    %87 = vector.broadcast %cst_13 : f32 to vector<2x128xf32>
    %88 = arith.maximumf %86, %87 : vector<2x128xf32>
    %c0_14 = arith.constant 0 : index
    %c0_15 = arith.constant 0 : index
    %89 = vector.load %arg7[%c0_14, %c0_15] : memref<1x128xf32, #tpu.memory_space<vmem>>, vector<1x128xf32>
    %cst_16 = arith.constant dense<0.000000e+00> : vector<1x2xf32>
    %90 = tpu.matmul %89, %88, %cst_16 {dimension_numbers = #tpu.dot_dimension_numbers<[1], [1], [0], [0], [0, 0, 1, 0], [], []>} : vector<1x128xf32>, vector<2x128xf32>, vector<1x2xf32> -> vector<1x2xf32>
    %c0_17 = arith.constant 0 : index
    %c0_18 = arith.constant 0 : index
    %91 = memref.load %arg8[%c0_17, %c0_18] : memref<1x1xf32, #tpu.memory_space<smem>>
    %92 = vector.broadcast %91 : f32 to vector<1x2xf32>
    %93 = arith.addf %90, %92 : vector<1x2xf32>
    %c0_19 = arith.constant 0 : index
    %c0_20 = arith.constant 0 : index
    %94 = vector.load %arg9[%c0_19, %c0_20] : memref<1x2xf32, #tpu.memory_space<vmem>>, vector<1x2xf32>
    tpu.vector_store %arg9[%c0_19, %c0_20], %93 {strides = array<i32>} : memref<1x2xf32, #tpu.memory_space<vmem>>, vector<1x2xf32>,
    return
  }
  func.func @transform_0(%arg0: i32) -> (i32, i32) {
    %c0_i32 = arith.constant 0 : i32
    %c0_i32_0 = arith.constant 0 : i32
    return %arg0, %c0_i32 : i32, i32
  }
  func.func @transform_1(%arg0: i32) -> (i32, i32) {
    %c0_i32 = arith.constant 0 : i32
    %c0_i32_0 = arith.constant 0 : i32
    return %arg0, %c0_i32 : i32, i32
  }
  func.func @transform_2(%arg0: i32) -> (i32, i32) {
    %c0_i32 = arith.constant 0 : i32
    %c0_i32_0 = arith.constant 0 : i32
    %c0_i32_1 = arith.constant 0 : i32
    return %c0_i32, %c0_i32_0 : i32, i32
  }
  func.func @transform_3(%arg0: i32) -> (i32, i32) {
    %c0_i32 = arith.constant 0 : i32
    %c0_i32_0 = arith.constant 0 : i32
    %c0_i32_1 = arith.constant 0 : i32
    return %c0_i32, %c0_i32_0 : i32, i32
  }
  func.func @transform_4(%arg0: i32) -> (i32, i32) {
    %c0_i32 = arith.constant 0 : i32
    %c0_i32_0 = arith.constant 0 : i32
    %c0_i32_1 = arith.constant 0 : i32
    return %c0_i32, %c0_i32_0 : i32, i32
  }
  func.func @transform_5(%arg0: i32) -> (i32, i32) {
    %c0_i32 = arith.constant 0 : i32
    %c0_i32_0 = arith.constant 0 : i32
    %c0_i32_1 = arith.constant 0 : i32
    return %c0_i32, %c0_i32_0 : i32, i32
  }
  func.func @transform_6(%arg0: i32) -> (i32, i32) {
    %c0_i32 = arith.constant 0 : i32
    %c0_i32_0 = arith.constant 0 : i32
    %c0_i32_1 = arith.constant 0 : i32
    return %c0_i32, %c0_i32_0 : i32, i32
  }
  func.func @transform_7(%arg0: i32) -> (i32, i32) {
    %c0_i32 = arith.constant 0 : i32
    %c0_i32_0 = arith.constant 0 : i32
    %c0_i32_1 = arith.constant 0 : i32
    return %c0_i32, %c0_i32_0 : i32, i32
  }
  func.func @transform_8(%arg0: i32) -> (i32, i32) {
    %c0_i32 = arith.constant 0 : i32
    %c0_i32_0 = arith.constant 0 : i32
    return %arg0, %c0_i32 : i32, i32
  }
}

</mosaic_0001>

<bundles_post_ra>
// kernel: tpu_custom_call.1
= control target key start
LH: loop header
LB: loop body
LE: loop exit
PB: predicated region body
PF: predicated region fallthrough
CT: control target
= control target key end

     0   :  { %14 = vsyncpa [#allocation4], 0  ;;  %s670_s0 = inlined_call_operand.vmem [shape: f32[2,8], index: 0, kind: input, shape index: {}]   ;;  %s671_s1 = inlined_call_operand.vmem [shape: f32[2,4], index: 1, kind: input, shape index: {}]   ;;  %s672_s2 = inlined_call_operand.hbm [shape: f32[12,128], index: 2, kind: input, shape index: {}]   ;;  %s673_s3 = inlined_call_operand.vmem [shape: f32[1,128], index: 3, kind: input, shape index: {}]   ;;  %s674_s4 = inlined_call_operand.hbm [shape: bf16[128,128], index: 4, kind: input, shape index: {}]   ;;  %s675_s5 = inlined_call_operand.vmem [shape: f32[1,128], index: 5, kind: input, shape index: {}]   ;;  %s676_s6 = inlined_call_operand.vmem [shape: f32[1,128], index: 6, kind: input, shape index: {}]   ;;  %s677_s7 = inlined_call_operand.<no memory space> [shape: f32[1,1], index: 7, kind: input, shape index: {}]   ;;  %s678_s8 = inlined_call_operand.hbm [shape: f32[1,2], index: 8, kind: output, shape index: {}]  }
   0x1   :  { %15 = vsyncpa [#allocation7], 0 }
   0x2   :  { %16 = vsyncpa [#allocation5], 0  ;;  %s554_s27 = smov [#allocation3]   ;;  %s482_s9 = scalar_lea.hbm %s672_s2, 256 }
   0x3   :  { %s26_s28 = sshll.u32 %s554_s27, 4  ;;  %p483_p0 = scmp.ne.s32.totalorder %s672_s2, %s482_s9  ;;  %s27_s28 = int_to_ptr.vmem [resolvable:$true] %s26_s28 }
   0x4   :  { %p486_p1 = scmp.lt.u32.totalorder %s482_s9, %s672_s2 }
   0x6   :  { %p488_p2 = pnand %p486_p1, %p483_p0 }
   0x8   :  { %491 = shalt.err (!%p488_p2)
}
   0x9   :  { %s492_s14 = scalar_lea.vmem %s27_s28, 256  ;;  %p497_p4 = scmp.lt.s32.totalorder %s27_s28, %s27_s28 }
   0xa   :  { %p493_p3 = scmp.ne.s32.totalorder %s27_s28, %s492_s14  ;;  %p498_p5 = scmp.lt.s32.totalorder %s492_s14, %s492_s14 }
   0xc   :  { %p499_p6 = por %p498_p5, %p497_p4 }
   0xe   :  { %p500_p7 = pnand %p499_p6, %p493_p3 }
  0x10   :  { %503 = shalt.err (!%p500_p7)
}
  0x11   :  { %s555_s15 = smov 128   ;;  %s556_s16 = smov 8  }
  0x12   :  { %32 = dma.hbm_to_vmem [thread:$0]  %s672_s2, 256, %s27_s28, [#allocation4], %s555_s15, %s555_s15, %s556_s16  }
  0x13   :  { %s557_s19 = smov [#allocation6]   ;;  %s504_s23 = scalar_lea.hbm %s674_s4, 1024 }
  0x14   :  { %s40_s20 = sshll.u32 %s557_s19, 4  ;;  %p505_p8 = scmp.ne.s32.totalorder %s674_s4, %s504_s23  ;;  %s41_s20 = int_to_ptr.vmem [resolvable:$true] %s40_s20 }
  0x15   :  { %p508_p9 = scmp.lt.u32.totalorder %s504_s23, %s674_s4 }
  0x17   :  { %p510_p10 = pnand %p508_p9, %p505_p8 }
  0x19   :  { %513 = shalt.err (!%p510_p10)
}
  0x1a   :  { %s514_s29 = scalar_lea.vmem %s41_s20, 1024  ;;  %p519_p12 = scmp.lt.s32.totalorder %s41_s20, %s41_s20 }
  0x1b   :  { %p515_p11 = scmp.ne.s32.totalorder %s41_s20, %s514_s29  ;;  %p520_p13 = scmp.lt.s32.totalorder %s514_s29, %s514_s29 }
  0x1d   :  { %p521_p0 = por %p520_p13, %p519_p12 }
  0x1f   :  { %p522_p1 = pnand %p521_p0, %p515_p11 }
  0x21   :  { %525 = shalt.err (!%p522_p1)
}
  0x22   :  { %s558_s2 = smov 64   ;;  %s559_s28 = smov 4  }
  0x23   :  { %46 = dma.hbm_to_vmem [thread:$0]  %s674_s4, 1024, %s41_s20, [#allocation7], %s558_s2, %s558_s2, %s559_s28  }
  0x24   :  { %548 = dma.done.wait [#allocation4], 256  }
  0x25   :  { %549 = vsyncadd [#allocation4], 4294967040 }
  0x26   :  { %550 = dma.done.wait [#allocation7], 1024  }
  0x27   :  { %551 = vsyncadd [#allocation7], 4294966272  ;;  %v560_v0 = vmov 2   ;;  %v561_v1 = vmov 0   ;;  %v60_v2 = vld [vmem:[%s670_s0] sm:$0x3]  ;;  %v69_v19 = vlaneseq }
  0x28   :  { %464 = vset.pattern.permute.xlu1 %v560_v0  ;;  %462 = vset.pattern.permute.xlu0 %v561_v1  ;;  %v562_v3 = vmov 3   ;;  %v563_v4 = vmov 1   ;;  %v564_v5 = vmov 4   ;;  %v565_v6 = vmov 5   ;;  %v474_v7 = vld [vmem:[#allocation6] sm:$0xff]   ;;  %v475_v10 = vld [vmem:[#allocation6 + $0x8] sm:$0xff]  }
  0x29   :  { %86 = vperm.xlu1 %464, %v60_v2   ;;  %66 = vperm.xlu0 %462, %v60_v2   ;;  %v566_v8 = vmov 0.0   ;;  %v61_v9 = vld [vmem:[%s671_s1] sm:$0x3]  ;;  %v567_v11 = vmov 6   ;;  %v568_v13 = vmov 7   ;;  %v477_v14 = vld [vmem:[#allocation6 + $0x18] sm:$0xff]  }
  0x2a   :  { %420 = vmatprep.subr.bf16.mxu0 %v566_v8  ;;  %440 = vmatprep.subr.mxu1 %v566_v8  ;;  %v476_v12 = vld [vmem:[#allocation6 + $0x10] sm:$0xff]   ;;  %v478_v15 = vld [vmem:[#allocation6 + $0x20] sm:$0xff]   ;;  %v479_v16 = vld [vmem:[#allocation6 + $0x28] sm:$0xff]   ;;  %vm569_vm0 = vmmov 0   ;;  %v70_v20 = vshrl.u32 %v69_v19, 7  ;;  %s570_s18 = smov [#allocation8]  }
  0x2b   :  { %421 = vmatpush3.bf16.msra.mxu0 %v474_v7  ;;  %v480_v17 = vld [vmem:[#allocation6 + $0x30] sm:$0xff]   ;;  %v481_v18 = vld [vmem:[#allocation6 + $0x38] sm:$0xff]   ;;  %436 = vmatprep.mubr.msk.bf16.mxu0 %vm569_vm0, %v566_v8  ;;  %s389_s19 = sshll.u32 %s570_s18, 4  ;;  %vm381_vm1 = vcmask 8192   ;;  %s390_s19 = int_to_ptr.vmem [resolvable:$true] %s389_s19 }
  0x2c   :  { %422 = vmatprep.subr.bf16.mxu0 %v566_v8  ;;  %442 = vmatprep.mubr.msk.f32.mxu1 %vm569_vm0, %v566_v8  ;;  %v71_v21 = vsub.s32 0, %v70_v20  ;;  %v81_v22 = vsub.s32 1, %v70_v20  ;;  %v62_v23 = vld [vmem:[#allocation3] sm:$0xff]  ;;  %v91_v24 = vsub.s32 2, %v70_v20  ;;  %v101_v28 = vsub.s32 3, %v70_v20  ;;  %s530_s20 = scalar_lea.vmem %s390_s19, 32  ;;  %p531_p3 = scmp.lt.s32.totalorder %s390_s19, %s390_s19 }
  0x2d   :  { %465 = vset.pattern.permute.xlu1 %v562_v3  ;;  %463 = vset.pattern.permute.xlu0 %v563_v4  ;;  %v111_v30 = vsub.s32 4, %v70_v20  ;;  %v121_v35 = vsub.s32 5, %v70_v20  ;;  %v131_v42 = vsub.s32 6, %v70_v20  ;;  %v141_v51 = vsub.s32 7, %v70_v20  ;;  %v63_v54 = vld [vmem:[#allocation3 + $0x8] sm:$0xf] }
  0x2e   :  { %96 = vperm.xlu1 %465, %v60_v2   ;;  %76 = vperm.xlu0 %463, %v60_v2   ;;  %v72_v26 = vrot.slane %v62_v23, %v71_v21  ;;  %v82_v29 = vrot.slane %v62_v23, %v81_v22  ;;  %v92_v31 = vrot.slane %v62_v23, %v91_v24 }
  0x2f   :  { %423 = vmatpush3.bf16.msra.mxu0 %v475_v10  ;;  %v102_v36 = vrot.slane %v62_v23, %v101_v28  ;;  %v112_v38 = vrot.slane %v62_v23, %v111_v30  ;;  %v122_v41 = vrot.slane %v62_v23, %v121_v35  ;;  %v132_v50 = vrot.slane %v62_v23, %v131_v42 }
  0x30   :  { %424 = vmatprep.subr.bf16.mxu0 %v566_v8  ;;  %v142_v57 = vrot.slane %v62_v23, %v141_v51  ;;  %v153_v58 = vrot.slane %v63_v54, %v71_v21 }
  0x32   :  { %466 = vset.pattern.permute.xlu1 %v564_v5  ;;  %467 = vset.pattern.permute.xlu0 %v565_v6  ;;  %v173_v5 = vrot.slane %v63_v54, %v91_v24  ;;  %v183_v6 = vrot.slane %v63_v54, %v101_v28 }
  0x33   :  { %106 = vperm.xlu1 %466, %v60_v2   ;;  %116 = vperm.xlu0 %467, %v60_v2  }
  0x34   :  { %425 = vmatpush3.bf16.msra.mxu0 %v476_v12 }
  0x35   :  { %426 = vmatprep.subr.bf16.mxu0 %v566_v8 }
  0x37   :  { %468 = vset.pattern.permute.xlu1 %v567_v11  ;;  %470 = vset.pattern.permute.xlu0 %v561_v1  ;;  %v163_v1 = vrot.slane %v63_v54, %v81_v22 }
  0x38   :  { %126 = vperm.xlu1 %468, %v60_v2   ;;  %147 = vperm.xlu0 %470, %v61_v9  }
  0x39   :  { %427 = vmatpush3.bf16.msra.mxu0 %v477_v14 }
  0x3a   :  { %428 = vmatprep.subr.bf16.mxu0 %v566_v8 }
  0x3c   :  { %469 = vset.pattern.permute.xlu1 %v568_v13  ;;  %473 = vset.pattern.permute.xlu0 %v562_v3  ;;  %v399_v13 = vld [vmem:[%s673_s3] ss:$0 sm:$0xff] }
  0x3d   :  { %136 = vperm.xlu1 %469, %v60_v2   ;;  %177 = vperm.xlu0 %473, %v61_v9  }
  0x3e   :  { %429 = vmatpush3.bf16.msra.mxu0 %v478_v15 }
  0x3f   :  { %430 = vmatprep.subr.bf16.mxu0 %v566_v8 }
  0x41   :  { %471 = vset.pattern.permute.xlu1 %v563_v4 }
  0x42   :  { %157 = vperm.xlu1 %471, %v61_v9   ;;  %431 = vmatpush3.bf16.msra.mxu0 %v479_v16 }
  0x43   :  { %432 = vmatprep.subr.bf16.mxu0 %v566_v8 }
  0x46   :  { %472 = vset.pattern.permute.xlu1 %v560_v0  ;;  %433 = vmatpush3.bf16.msra.mxu0 %v480_v17 }
  0x47   :  { %167 = vperm.xlu1 %472, %v61_v9   ;;  %434 = vmatprep.subr.bf16.mxu0 %v566_v8 }
  0x4a   :  { %435 = vmatpush3.bf16.msra.mxu0 %v481_v18  ;;  %v400_v18 = vld [vmem:[%s675_s5] ss:$0 sm:$0xff]  ;;  %s526_s5 = scalar_lea.vmem %s390_s19, 16 }
  0x4b   :  { %p527_p2 = scmp.ne.s32.totalorder %s390_s19, %s526_s5  ;;  %p532_p4 = scmp.lt.s32.totalorder %s530_s20, %s526_s5 }
  0x4d   :  { %p533_p5 = por %p532_p4, %p531_p3 }
  0x4f   :  { %p534_p6 = pnand %p533_p5, %p527_p2 }
  0xa8   :  { %v87_v25 = vpop.permute.xlu1 %86  ;;  %v67_v27 = vpop.permute.xlu0 %66 }
  0xa9   :  { %v73_v32 = vmul.f32 %v72_v26, %v67_v27  ;;  %v93_v39 = vmul.f32 %v92_v31, %v87_v25  ;;  %v308_v25 = vld [vmem:[%s676_s6] sm:$0x1]  ;;  %v310_v26 = vstv %s677_s7 }
  0xad   :  { %v97_v33 = vpop.permute.xlu1 %96  ;;  %v77_v34 = vpop.permute.xlu0 %76 }
  0xae   :  { %v83_v37 = vmul.f32 %v82_v29, %v77_v34  ;;  %v103_v43 = vmul.f32 %v102_v36, %v97_v33 }
  0xb0   :  { %v84_v40 = vadd.f32 %v83_v37, %v73_v32 }
  0xb2   :  { %v94_v44 = vadd.f32 %v93_v39, %v84_v40  ;;  %v107_v45 = vpop.permute.xlu1 %106  ;;  %v117_v46 = vpop.permute.xlu0 %116 }
  0xb3   :  { %v113_v47 = vmul.f32 %v112_v38, %v107_v45  ;;  %v123_v49 = vmul.f32 %v122_v41, %v117_v46 }
  0xb4   :  { %v104_v48 = vadd.f32 %v103_v43, %v94_v44 }
  0xb6   :  { %v114_v52 = vadd.f32 %v113_v47, %v104_v48 }
  0xb7   :  { %v127_v53 = vpop.permute.xlu1 %126  ;;  %v148_v60 = vpop.permute.xlu0 %147 }
  0xb8   :  { %v124_v55 = vadd.f32 %v123_v49, %v114_v52  ;;  %v133_v56 = vmul.f32 %v132_v50, %v127_v53  ;;  %v154_v0 = vmul.f32 %v153_v58, %v148_v60 }
  0xba   :  { %v134_v61 = vadd.f32 %v133_v56, %v124_v55 }
  0xbc   :  { %v137_v59 = vpop.permute.xlu1 %136  ;;  %v178_v7 = vpop.permute.xlu0 %177 }
  0xbd   :  { %v143_v62 = vmul.f32 %v142_v57, %v137_v59  ;;  %v184_v11 = vmul.f32 %v183_v6, %v178_v7 }
  0xbf   :  { %v144_v63 = vadd.f32 %v143_v62, %v134_v61 }
  0xc1   :  { %v158_v2 = vpop.permute.xlu1 %157  ;;  %v155_v3 = vadd.f32 %v154_v0, %v144_v63 }
  0xc2   :  { %v164_v4 = vmul.f32 %v163_v1, %v158_v2 }
  0xc4   :  { %v165_v9 = vadd.f32 %v164_v4, %v155_v3 }
  0xc6   :  { %v168_v8 = vpop.permute.xlu1 %167 }
  0xc7   :  { %v174_v10 = vmul.f32 %v173_v5, %v168_v8 }
  0xc9   :  { %v175_v12 = vadd.f32 %v174_v10, %v165_v9 }
  0xcb   :  { %v185_v14 = vadd.f32 %v184_v11, %v175_v12 }
  0xcd   :  { %v193_v15 = vadd.f32 %v399_v13, %v185_v14 }
  0xcf   :  { %v194_v16 = vmax.f32 %v193_v15, 0.0 }
  0xd1   :  { %v195_v17 = vpack.c.bf16 %v194_v16, %v194_v16 }
  0xd3   :  { %437 = vmatmul.mubr.bf16.vlgmr.msra.gmra.mrb[0].mxu0 %v195_v17 }
 0x1a6   :  { %v301_v19 = vpop.f32.mrb[0].mxu0 }
 0x1a7   :  { %v302_v20 = vadd.f32 %v400_v18, %v301_v19  ;;  %v438_v21 = vpop.f32.mrb[1].mxu0 }
 0x1a8   :  { %v304_v22 = vpop.f32.mrb[2].mxu0 }
 0x1a9   :  { %v307_v23 = vmax.f32 %v302_v20, 0.0  ;;  %v439_v24 = vpop.f32.mrb[3].mxu0 }
 0x1ab   :  { %441 = vmatpush3.xpose.msra.mxu1 %v307_v23 }
 0x1ae   :  { %443 = vmatmul.mubr.f32.vlgmr.msra.gmra.mrb[0].mxu1 %v308_v25 }
 0x281   :  { %v377_v27 = vpop.f32.mrb[0].mxu1 }
 0x282   :  { %v378_v28 = vadd.f32 %v377_v27, %v310_v26  ;;  %v444_v29 = vpop.f32.mrb[1].mxu1 }
 0x284   :  { %382 = vst.msk [vmem:[#allocation8] sm:$0x1] %vm381_vm1, %v378_v28 }
 0x285   :  { %537 = shalt.err (!%p534_p6)
}
 0x286   :  { %s538_s7 = scalar_lea.hbm %s678_s8, 16 }
 0x287   :  { %p539_p7 = scmp.ne.s32.totalorder %s678_s8, %s538_s7  ;;  %p542_p8 = scmp.lt.u32.totalorder %s538_s7, %s678_s8 }
 0x289   :  { %p544_p9 = pnand %p542_p8, %p539_p7 }
 0x28b   :  { %547 = shalt.err (!%p544_p9)
}
 0x28c   :  { %392 = dma.vmem_to_hbm [thread:$0]  %s390_s19, 16, %s678_s8, [#allocation5]  }
 0x28d   :  { %552 = dma.done.wait [#allocation5], 16  }
 0x28e   :  { %553 = vsyncadd [#allocation5], 4294967280 }
 0x28f   :  { %396 = vsyncpa [#allocation4], 1 }
 0x290   :  { %397 = vsyncpa [#allocation7], 1 }
 0x291   :  { %398 = vsyncpa [#allocation5], 1 }

// kernel: tpu_custom_call.1
= control target key start
LH: loop header
LB: loop body
LE: loop exit
PB: predicated region body
PF: predicated region fallthrough
CT: control target
= control target key end

     0   :  { %14 = vsyncpa [#allocation4], 0  ;;  %s670_s0 = inlined_call_operand.vmem [shape: f32[2,8], index: 0, kind: input, shape index: {}]   ;;  %s671_s1 = inlined_call_operand.vmem [shape: f32[2,4], index: 1, kind: input, shape index: {}]   ;;  %s672_s2 = inlined_call_operand.hbm [shape: f32[12,128], index: 2, kind: input, shape index: {}]   ;;  %s673_s3 = inlined_call_operand.vmem [shape: f32[1,128], index: 3, kind: input, shape index: {}]   ;;  %s674_s4 = inlined_call_operand.hbm [shape: bf16[128,128], index: 4, kind: input, shape index: {}]   ;;  %s675_s5 = inlined_call_operand.vmem [shape: f32[1,128], index: 5, kind: input, shape index: {}]   ;;  %s676_s6 = inlined_call_operand.vmem [shape: f32[1,128], index: 6, kind: input, shape index: {}]   ;;  %s677_s7 = inlined_call_operand.<no memory space> [shape: f32[1,1], index: 7, kind: input, shape index: {}]   ;;  %s678_s8 = inlined_call_operand.hbm [shape: f32[1,2], index: 8, kind: output, shape index: {}]  }
   0x1   :  { %15 = vsyncpa [#allocation7], 0 }
   0x2   :  { %16 = vsyncpa [#allocation5], 0  ;;  %s554_s27 = smov [#allocation3]   ;;  %s482_s9 = scalar_lea.hbm %s672_s2, 256 }
   0x3   :  { %s26_s28 = sshll.u32 %s554_s27, 4  ;;  %p483_p0 = scmp.ne.s32.totalorder %s672_s2, %s482_s9  ;;  %s27_s28 = int_to_ptr.vmem [resolvable:$true] %s26_s28 }
   0x4   :  { %p486_p1 = scmp.lt.u32.totalorder %s482_s9, %s672_s2 }
   0x6   :  { %p488_p2 = pnand %p486_p1, %p483_p0 }
   0x8   :  { %491 = shalt.err (!%p488_p2)
}
   0x9   :  { %s492_s14 = scalar_lea.vmem %s27_s28, 256  ;;  %p497_p4 = scmp.lt.s32.totalorder %s27_s28, %s27_s28 }
   0xa   :  { %p493_p3 = scmp.ne.s32.totalorder %s27_s28, %s492_s14  ;;  %p498_p5 = scmp.lt.s32.totalorder %s492_s14, %s492_s14 }
   0xc   :  { %p499_p6 = por %p498_p5, %p497_p4 }
   0xe   :  { %p500_p7 = pnand %p499_p6, %p493_p3 }
  0x10   :  { %503 = shalt.err (!%p500_p7)
}
  0x11   :  { %s555_s15 = smov 128   ;;  %s556_s16 = smov 8  }
  0x12   :  { %32 = dma.hbm_to_vmem [thread:$0]  %s672_s2, 256, %s27_s28, [#allocation4], %s555_s15, %s555_s15, %s556_s16  }
  0x13   :  { %s557_s19 = smov [#allocation6]   ;;  %s504_s23 = scalar_lea.hbm %s674_s4, 1024 }
  0x14   :  { %s40_s20 = sshll.u32 %s557_s19, 4  ;;  %p505_p8 = scmp.ne.s32.totalorder %s674_s4, %s504_s23  ;;  %s41_s20 = int_to_ptr.vmem [resolvable:$true] %s40_s20 }
  0x15   :  { %p508_p9 = scmp.lt.u32.totalorder %s504_s23, %s674_s4 }
  0x17   :  { %p510_p10 = pnand %p508_p9, %p505_p8 }
  0x19   :  { %513 = shalt.err (!%p510_p10)
}
  0x1a   :  { %s514_s29 = scalar_lea.vmem %s41_s20, 1024  ;;  %p519_p12 = scmp.lt.s32.totalorder %s41_s20, %s41_s20 }
  0x1b   :  { %p515_p11 = scmp.ne.s32.totalorder %s41_s20, %s514_s29  ;;  %p520_p13 = scmp.lt.s32.totalorder %s514_s29, %s514_s29 }
  0x1d   :  { %p521_p0 = por %p520_p13, %p519_p12 }
  0x1f   :  { %p522_p1 = pnand %p521_p0, %p515_p11 }
  0x21   :  { %525 = shalt.err (!%p522_p1)
}
  0x22   :  { %s558_s2 = smov 64   ;;  %s559_s28 = smov 4  }
  0x23   :  { %46 = dma.hbm_to_vmem [thread:$0]  %s674_s4, 1024, %s41_s20, [#allocation7], %s558_s2, %s558_s2, %s559_s28  }
  0x24   :  { %548 = dma.done.wait [#allocation4], 256  }
  0x25   :  { %549 = vsyncadd [#allocation4], 4294967040 }
  0x26   :  { %550 = dma.done.wait [#allocation7], 1024  }
  0x27   :  { %551 = vsyncadd [#allocation7], 4294966272  ;;  %v560_v0 = vmov 2   ;;  %v561_v1 = vmov 0   ;;  %v60_v2 = vld [vmem:[%s670_s0] sm:$0x3]  ;;  %v69_v19 = vlaneseq }
  0x28   :  { %464 = vset.pattern.permute.xlu1 %v560_v0  ;;  %462 = vset.pattern.permute.xlu0 %v561_v1  ;;  %v562_v3 = vmov 3   ;;  %v563_v4 = vmov 1   ;;  %v564_v5 = vmov 4   ;;  %v565_v6 = vmov 5   ;;  %v474_v7 = vld [vmem:[#allocation6] sm:$0xff]   ;;  %v475_v10 = vld [vmem:[#allocation6 + $0x8] sm:$0xff]  }
  0x29   :  { %86 = vperm.xlu1 %464, %v60_v2   ;;  %66 = vperm.xlu0 %462, %v60_v2   ;;  %v566_v8 = vmov 0.0   ;;  %v61_v9 = vld [vmem:[%s671_s1] sm:$0x3]  ;;  %v567_v11 = vmov 6   ;;  %v568_v13 = vmov 7   ;;  %v477_v14 = vld [vmem:[#allocation6 + $0x18] sm:$0xff]  }
  0x2a   :  { %420 = vmatprep.subr.bf16.mxu0 %v566_v8  ;;  %440 = vmatprep.subr.mxu1 %v566_v8  ;;  %v476_v12 = vld [vmem:[#allocation6 + $0x10] sm:$0xff]   ;;  %v478_v15 = vld [vmem:[#allocation6 + $0x20] sm:$0xff]   ;;  %v479_v16 = vld [vmem:[#allocation6 + $0x28] sm:$0xff]   ;;  %vm569_vm0 = vmmov 0   ;;  %v70_v20 = vshrl.u32 %v69_v19, 7  ;;  %s570_s18 = smov [#allocation8]  }
  0x2b   :  { %421 = vmatpush3.bf16.msra.mxu0 %v474_v7  ;;  %v480_v17 = vld [vmem:[#allocation6 + $0x30] sm:$0xff]   ;;  %v481_v18 = vld [vmem:[#allocation6 + $0x38] sm:$0xff]   ;;  %436 = vmatprep.mubr.msk.bf16.mxu0 %vm569_vm0, %v566_v8  ;;  %s389_s19 = sshll.u32 %s570_s18, 4  ;;  %vm381_vm1 = vcmask 8192   ;;  %s390_s19 = int_to_ptr.vmem [resolvable:$true] %s389_s19 }
  0x2c   :  { %422 = vmatprep.subr.bf16.mxu0 %v566_v8  ;;  %442 = vmatprep.mubr.msk.f32.mxu1 %vm569_vm0, %v566_v8  ;;  %v71_v21 = vsub.s32 0, %v70_v20  ;;  %v81_v22 = vsub.s32 1, %v70_v20  ;;  %v62_v23 = vld [vmem:[#allocation3] sm:$0xff]  ;;  %v91_v24 = vsub.s32 2, %v70_v20  ;;  %v101_v28 = vsub.s32 3, %v70_v20  ;;  %s530_s20 = scalar_lea.vmem %s390_s19, 32  ;;  %p531_p3 = scmp.lt.s32.totalorder %s390_s19, %s390_s19 }
  0x2d   :  { %465 = vset.pattern.permute.xlu1 %v562_v3  ;;  %463 = vset.pattern.permute.xlu0 %v563_v4  ;;  %v111_v30 = vsub.s32 4, %v70_v20  ;;  %v121_v35 = vsub.s32 5, %v70_v20  ;;  %v131_v42 = vsub.s32 6, %v70_v20  ;;  %v141_v51 = vsub.s32 7, %v70_v20  ;;  %v63_v54 = vld [vmem:[#allocation3 + $0x8] sm:$0xf] }
  0x2e   :  { %96 = vperm.xlu1 %465, %v60_v2   ;;  %76 = vperm.xlu0 %463, %v60_v2   ;;  %v72_v26 = vrot.slane %v62_v23, %v71_v21  ;;  %v82_v29 = vrot.slane %v62_v23, %v81_v22  ;;  %v92_v31 = vrot.slane %v62_v23, %v91_v24 }
  0x2f   :  { %423 = vmatpush3.bf16.msra.mxu0 %v475_v10  ;;  %v102_v36 = vrot.slane %v62_v23, %v101_v28  ;;  %v112_v38 = vrot.slane %v62_v23, %v111_v30  ;;  %v122_v41 = vrot.slane %v62_v23, %v121_v35  ;;  %v132_v50 = vrot.slane %v62_v23, %v131_v42 }
  0x30   :  { %424 = vmatprep.subr.bf16.mxu0 %v566_v8  ;;  %v142_v57 = vrot.slane %v62_v23, %v141_v51  ;;  %v153_v58 = vrot.slane %v63_v54, %v71_v21 }
  0x32   :  { %466 = vset.pattern.permute.xlu1 %v564_v5  ;;  %467 = vset.pattern.permute.xlu0 %v565_v6  ;;  %v173_v5 = vrot.slane %v63_v54, %v91_v24  ;;  %v183_v6 = vrot.slane %v63_v54, %v101_v28 }
  0x33   :  { %106 = vperm.xlu1 %466, %v60_v2   ;;  %116 = vperm.xlu0 %467, %v60_v2  }
  0x34   :  { %425 = vmatpush3.bf16.msra.mxu0 %v476_v12 }
  0x35   :  { %426 = vmatprep.subr.bf16.mxu0 %v566_v8 }
  0x37   :  { %468 = vset.pattern.permute.xlu1 %v567_v11  ;;  %470 = vset.pattern.permute.xlu0 %v561_v1  ;;  %v163_v1 = vrot.slane %v63_v54, %v81_v22 }
  0x38   :  { %126 = vperm.xlu1 %468, %v60_v2   ;;  %147 = vperm.xlu0 %470, %v61_v9  }
  0x39   :  { %427 = vmatpush3.bf16.msra.mxu0 %v477_v14 }
  0x3a   :  { %428 = vmatprep.subr.bf16.mxu0 %v566_v8 }
  0x3c   :  { %469 = vset.pattern.permute.xlu1 %v568_v13  ;;  %473 = vset.pattern.permute.xlu0 %v562_v3  ;;  %v399_v13 = vld [vmem:[%s673_s3] ss:$0 sm:$0xff] }
  0x3d   :  { %136 = vperm.xlu1 %469, %v60_v2   ;;  %177 = vperm.xlu0 %473, %v61_v9  }
  0x3e   :  { %429 = vmatpush3.bf16.msra.mxu0 %v478_v15 }
  0x3f   :  { %430 = vmatprep.subr.bf16.mxu0 %v566_v8 }
  0x41   :  { %471 = vset.pattern.permute.xlu1 %v563_v4 }
  0x42   :  { %157 = vperm.xlu1 %471, %v61_v9   ;;  %431 = vmatpush3.bf16.msra.mxu0 %v479_v16 }
  0x43   :  { %432 = vmatprep.subr.bf16.mxu0 %v566_v8 }
  0x46   :  { %472 = vset.pattern.permute.xlu1 %v560_v0  ;;  %433 = vmatpush3.bf16.msra.mxu0 %v480_v17 }
  0x47   :  { %167 = vperm.xlu1 %472, %v61_v9   ;;  %434 = vmatprep.subr.bf16.mxu0 %v566_v8 }
  0x4a   :  { %435 = vmatpush3.bf16.msra.mxu0 %v481_v18  ;;  %v400_v18 = vld [vmem:[%s675_s5] ss:$0 sm:$0xff]  ;;  %s526_s5 = scalar_lea.vmem %s390_s19, 16 }
  0x4b   :  { %p527_p2 = scmp.ne.s32.totalorder %s390_s19, %s526_s5  ;;  %p532_p4 = scmp.lt.s32.totalorder %s530_s20, %s526_s5 }
  0x4d   :  { %p533_p5 = por %p532_p4, %p531_p3 }
  0x4f   :  { %p534_p6 = pnand %p533_p5, %p527_p2 }
  0xa8   :  { %v87_v25 = vpop.permute.xlu1 %86  ;;  %v67_v27 = vpop.permute.xlu0 %66 }
  0xa9   :  { %v73_v32 = vmul.f32 %v72_v26, %v67_v27  ;;  %v93_v39 = vmul.f32 %v92_v31, %v87_v25  ;;  %v308_v25 = vld [vmem:[%s676_s6] sm:$0x1]  ;;  %v310_v26 = vstv %s677_s7 }
  0xad   :  { %v97_v33 = vpop.permute.xlu1 %96  ;;  %v77_v34 = vpop.permute.xlu0 %76 }
  0xae   :  { %v83_v37 = vmul.f32 %v82_v29, %v77_v34  ;;  %v103_v43 = vmul.f32 %v102_v36, %v97_v33 }
  0xb0   :  { %v84_v40 = vadd.f32 %v83_v37, %v73_v32 }
  0xb2   :  { %v94_v44 = vadd.f32 %v93_v39, %v84_v40  ;;  %v107_v45 = vpop.permute.xlu1 %106  ;;  %v117_v46 = vpop.permute.xlu0 %116 }
  0xb3   :  { %v113_v47 = vmul.f32 %v112_v38, %v107_v45  ;;  %v123_v49 = vmul.f32 %v122_v41, %v117_v46 }
  0xb4   :  { %v104_v48 = vadd.f32 %v103_v43, %v94_v44 }
  0xb6   :  { %v114_v52 = vadd.f32 %v113_v47, %v104_v48 }
  0xb7   :  { %v127_v53 = vpop.permute.xlu1 %126  ;;  %v148_v60 = vpop.permute.xlu0 %147 }
  0xb8   :  { %v124_v55 = vadd.f32 %v123_v49, %v114_v52  ;;  %v133_v56 = vmul.f32 %v132_v50, %v127_v53  ;;  %v154_v0 = vmul.f32 %v153_v58, %v148_v60 }
  0xba   :  { %v134_v61 = vadd.f32 %v133_v56, %v124_v55 }
  0xbc   :  { %v137_v59 = vpop.permute.xlu1 %136  ;;  %v178_v7 = vpop.permute.xlu0 %177 }
  0xbd   :  { %v143_v62 = vmul.f32 %v142_v57, %v137_v59  ;;  %v184_v11 = vmul.f32 %v183_v6, %v178_v7 }
  0xbf   :  { %v144_v63 = vadd.f32 %v143_v62, %v134_v61 }
  0xc1   :  { %v158_v2 = vpop.permute.xlu1 %157  ;;  %v155_v3 = vadd.f32 %v154_v0, %v144_v63 }
  0xc2   :  { %v164_v4 = vmul.f32 %v163_v1, %v158_v2 }
  0xc4   :  { %v165_v9 = vadd.f32 %v164_v4, %v155_v3 }
  0xc6   :  { %v168_v8 = vpop.permute.xlu1 %167 }
  0xc7   :  { %v174_v10 = vmul.f32 %v173_v5, %v168_v8 }
  0xc9   :  { %v175_v12 = vadd.f32 %v174_v10, %v165_v9 }
  0xcb   :  { %v185_v14 = vadd.f32 %v184_v11, %v175_v12 }
  0xcd   :  { %v193_v15 = vadd.f32 %v399_v13, %v185_v14 }
  0xcf   :  { %v194_v16 = vmax.f32 %v193_v15, 0.0 }
  0xd1   :  { %v195_v17 = vpack.c.bf16 %v194_v16, %v194_v16 }
  0xd3   :  { %437 = vmatmul.mubr.bf16.vlgmr.msra.gmra.mrb[0].mxu0 %v195_v17 }
 0x1a6   :  { %v301_v19 = vpop.f32.mrb[0].mxu0 }
 0x1a7   :  { %v302_v20 = vadd.f32 %v400_v18, %v301_v19  ;;  %v438_v21 = vpop.f32.mrb[1].mxu0 }
 0x1a8   :  { %v304_v22 = vpop.f32.mrb[2].mxu0 }
 0x1a9   :  { %v307_v23 = vmax.f32 %v302_v20, 0.0  ;;  %v439_v24 = vpop.f32.mrb[3].mxu0 }
 0x1ab   :  { %441 = vmatpush3.xpose.msra.mxu1 %v307_v23 }
 0x1ae   :  { %443 = vmatmul.mubr.f32.vlgmr.msra.gmra.mrb[0].mxu1 %v308_v25 }
 0x281   :  { %v377_v27 = vpop.f32.mrb[0].mxu1 }
 0x282   :  { %v378_v28 = vadd.f32 %v377_v27, %v310_v26  ;;  %v444_v29 = vpop.f32.mrb[1].mxu1 }
 0x284   :  { %382 = vst.msk [vmem:[#allocation8] sm:$0x1] %vm381_vm1, %v378_v28 }
 0x285   :  { %537 = shalt.err (!%p534_p6)
}
 0x286   :  { %s538_s7 = scalar_lea.hbm %s678_s8, 16 }
 0x287   :  { %p539_p7 = scmp.ne.s32.totalorder %s678_s8, %s538_s7  ;;  %p542_p8 = scmp.lt.u32.totalorder %s538_s7, %s678_s8 }
 0x289   :  { %p544_p9 = pnand %p542_p8, %p539_p7 }
 0x28b   :  { %547 = shalt.err (!%p544_p9)
}
 0x28c   :  { %392 = dma.vmem_to_hbm [thread:$0]  %s390_s19, 16, %s678_s8, [#allocation5]  }
 0x28d   :  { %552 = dma.done.wait [#allocation5], 16  }
 0x28e   :  { %553 = vsyncadd [#allocation5], 4294967280 }
 0x28f   :  { %396 = vsyncpa [#allocation4], 1 }
 0x290   :  { %397 = vsyncpa [#allocation7], 1 }
 0x291   :  { %398 = vsyncpa [#allocation5], 1 }

</bundles_post_ra>
